<compile_context>
chip_gen: v7x
topology: tpu7x:2x2x1
jax: 0.10.0
libtpu: 0.0.40
codegen_flags: <defaults>
</compile_context>

<pallas_src>
import functools

import jax
import jax.numpy as jnp
from jax.experimental import pallas as pl
from jax.experimental.pallas import tpu as pltpu

# Same scaling constants as the PyTorch module.
SCALE_DICT = {
    0: (-0.996078431372549, 0.1715728751454531),
    1: (0.0, 1.9921875),
    2: (0.0, 1.0),
    3: (0.0, 2.0),
}

_LANES = 128
_SUBLANES = 8
# ~4 MiB of input data per grid step on the packed (rows, 128) path: big enough
# to sit at ~86% of HBM roofline even on v7x, small enough to double-buffer
# everywhere (in+out ~12 MiB at C=4 f32).
_TARGET_IN_BYTES_PACKED = 4 << 20
# The flat (C, HW) fallback pads the sublane dim (C/OC -> 8) in VMEM, so use a
# smaller data target to keep the padded footprint comparable (~16 MiB total).
_TARGET_IN_BYTES_FLAT = 2 << 20


def _saturation_kernel(x_ref, o_ref, *, chroma_mode, return_mode):
    # x_ref: (TB, C, TR, 128) or (TB, C, TPIX) block in VMEM.
    # o_ref: (TB, OC, TR, 128) or (TB, OC, TPIX).
    x = x_ref[...]

    # Channel reduction over axis 1; purely per-pixel everywhere else.
    max_channel = jnp.max(x, axis=1, keepdims=True)
    min_channel = jnp.min(x, axis=1, keepdims=True)

    # hsv = where(max == 0, 0, 1 - min/max)
    max_is_zero = max_channel == 0.0
    hsv = jnp.where(
        max_is_zero,
        0.0,
        1.0 - min_channel / jnp.where(max_is_zero, 1.0, max_channel),
    )

    # hls = where(max == min, 0, (max-min) / (1 - |1 - (max+min)|))
    eq = max_channel == min_channel
    denom = 1.0 - jnp.abs(1.0 - (max_channel + min_channel))
    hls = jnp.where(eq, 0.0, (max_channel - min_channel) / jnp.where(eq, 1.0, denom))

    if chroma_mode == 0:
        result = hsv - hls
    elif chroma_mode == 1:
        hls_nz = hls != 0.0
        result = jnp.where(hls_nz, hsv / jnp.where(hls_nz, hls, 1.0), 0.0)
    elif chroma_mode == 2:
        result = hsv * hls
    elif chroma_mode == 3:
        result = hsv + hls
    else:
        raise ValueError("No such mode.")

    minv, maxv = SCALE_DICT[chroma_mode]
    inv_scale = 1.0 / (maxv - minv)  # folded at trace time
    result = jnp.clip((result - minv) * inv_scale, 0.0, 1.0)

    if return_mode == "default":
        o_ref[...] = result.astype(o_ref.dtype)
    elif return_mode == "mulmax":
        o_ref[...] = (result * max_channel).astype(o_ref.dtype)
    elif return_mode == "catmax":
        # Two direct slice stores on the channel axis instead of a concatenate.
        o_ref[:, 0:1] = result.astype(o_ref.dtype)
        o_ref[:, 1:2] = max_channel.astype(o_ref.dtype)
    else:
        raise ValueError("No such mode. Available modes are: default, mulmax, catmax")


def _round_up(x, m):
    return pl.cdiv(x, m) * m


def _padded_block_bytes(block_shape, itemsize):
    # VMEM footprint of one buffer of this block, with (8, 128) tile padding on
    # the last two dims.
    lead = 1
    for d in block_shape[:-2]:
        lead *= d
    sub = _round_up(block_shape[-2], _SUBLANES)
    lane = _round_up(block_shape[-1], _LANES)
    return lead * sub * lane * itemsize


def saturation_layer(x, *, chroma_mode=0, return_mode="default"):
    """x: (B, C, H, W) float -> (B, out_channels, H, W)."""
    if return_mode not in ("default", "mulmax", "catmax"):
        raise ValueError("No such mode. Available modes are: default, mulmax, catmax")
    if chroma_mode not in SCALE_DICT:
        raise ValueError("No such mode.")

    B, C, H, W = x.shape
    HW = H * W
    OC = 2 if return_mode == "catmax" else 1
    itemsize = x.dtype.itemsize

    kernel = functools.partial(
        _saturation_kernel, chroma_mode=chroma_mode, return_mode=return_mode
    )

    if HW % _LANES == 0:
        # Packed path: free reshape, full (8,128) vregs, dense stores.
        rows = HW // _LANES
        x_view = x.reshape(B, C, rows, _LANES)

        rows_target = max(
            _SUBLANES,
            (_TARGET_IN_BYTES_PACKED // (C * _LANES * itemsize))
            // _SUBLANES
            * _SUBLANES,
        )
        tr = rows if rows <= rows_target else rows_target  # full dim or mult of 8

        per_item = C * tr * _LANES * itemsize
        tb = int(min(B, max(1, _TARGET_IN_BYTES_PACKED // max(per_item, 1))))

        # Keep >= 2 grid steps when possible so v7x's two TensorCores both get
        # work; negligible cost on 1-TC chips.
        if pl.cdiv(B, tb) * pl.cdiv(rows, tr) < 2:
            if B >= 2:
                tb = (B + 1) // 2
            elif rows > _SUBLANES:
                tr = min(tr, _round_up(pl.cdiv(rows, 2), _SUBLANES))

        grid = (pl.cdiv(B, tb), pl.cdiv(rows, tr))
        in_block = (tb, C, tr, _LANES)
        out_block = (tb, OC, tr, _LANES)
        in_spec = pl.BlockSpec(in_block, lambda b, r: (b, 0, r, 0))
        out_spec = pl.BlockSpec(out_block, lambda b, r: (b, 0, r, 0))
        out_shape = jax.ShapeDtypeStruct((B, OC, rows, _LANES), x.dtype)
    else:
        # Flat path for HW not a multiple of 128: no pad / slice HBM round-trips.
        # Lane block is a multiple of 128; the ragged tail is a partial block
        # (OOB output stores are dropped by Pallas).
        x_view = x.reshape(B, C, HW)

        pix_target = max(
            _LANES,
            (_TARGET_IN_BYTES_FLAT // (C * itemsize)) // _LANES * _LANES,
        )
        tpix = min(pix_target, _round_up(HW, _LANES))

        per_item = C * tpix * itemsize
        tb = int(min(B, max(1, _TARGET_IN_BYTES_FLAT // max(per_item, 1))))

        if pl.cdiv(B, tb) * pl.cdiv(HW, tpix) < 2:
            if B >= 2:
                tb = (B + 1) // 2
            elif tpix > _LANES:
                tpix = min(tpix, _round_up(pl.cdiv(HW, 2), _LANES))

        grid = (pl.cdiv(B, tb), pl.cdiv(HW, tpix))
        in_block = (tb, C, tpix)
        out_block = (tb, OC, tpix)
        in_spec = pl.BlockSpec(in_block, lambda b, p: (b, 0, p))
        out_spec = pl.BlockSpec(out_block, lambda b, p: (b, 0, p))
        out_shape = jax.ShapeDtypeStruct((B, OC, HW), x.dtype)

    # VMEM limit derived from actual padded block bytes (x2 double buffering +
    # slack), floored at 32 MiB (v5e default scoped limit is 16 MiB), capped at
    # 48 MiB (safe under v7x's 64 MiB physical VMEM).
    block_bytes = _padded_block_bytes(in_block, itemsize) + _padded_block_bytes(
        out_block, itemsize
    )
    vmem_limit = int(min(max(3 * block_bytes, 32 << 20), 48 << 20))

    out = pl.pallas_call(
        kernel,
        out_shape=out_shape,
        grid=grid,
        in_specs=[in_spec],
        out_specs=out_spec,
        compiler_params=pltpu.CompilerParams(
            dimension_semantics=("parallel", "parallel"),
            vmem_limit_bytes=vmem_limit,
        ),
    )(x_view)

    return out.reshape(B, OC, H, W)


def _reference(x, chroma_mode=0, return_mode="default"):
    # Pure-JAX reference mirroring the PyTorch forward.
    max_channel = jnp.max(x, axis=1, keepdims=True)
    min_channel = jnp.min(x, axis=1, keepdims=True)
    max_is_zero = max_channel == 0
    hsv = jnp.where(
        max_is_zero, 0.0, 1.0 - min_channel / jnp.where(max_is_zero, 1.0, max_channel)
    )
    eq = max_channel == min_channel
    denom = 1.0 - jnp.abs(1.0 - (max_channel + min_channel))
    hls = jnp.where(eq, 0.0, (max_channel - min_channel) / jnp.where(eq, 1.0, denom))
    if chroma_mode == 0:
        result = hsv - hls
    elif chroma_mode == 1:
        result = jnp.where(hls != 0, hsv / jnp.where(hls != 0, hls, 1.0), 0.0)
    elif chroma_mode == 2:
        result = hsv * hls
    else:
        result = hsv + hls
    minv, maxv = SCALE_DICT[chroma_mode]
    result = jnp.clip((result - minv) / (maxv - minv), 0.0, 1.0)
    if return_mode == "default":
        return result
    if return_mode == "mulmax":
        return result * max_channel
    return jnp.concatenate((result, max_channel), axis=1)


if __name__ == "__main__":
    key = jax.random.PRNGKey(0)
    k1, k2 = jax.random.split(key)
    ok = True

    # 128-aligned pixel count -> packed (rows, 128) path.
    x_aligned = jax.random.uniform(k1, (2, 4, 16, 16), dtype=jnp.float32)
    for chroma_mode in (0, 1, 2, 3):
        for return_mode in ("default", "mulmax", "catmax"):
            out = saturation_layer(
                x_aligned, chroma_mode=chroma_mode, return_mode=return_mode
            )
            out = jax.block_until_ready(out)
            ref = _reference(x_aligned, chroma_mode, return_mode)
            if out.shape != ref.shape or not jnp.allclose(
                out, ref, atol=1e-5, rtol=1e-5
            ):
                ok = False

    # Non-128-aligned pixel count -> flat path with a partial (masked) block.
    x_ragged = jax.random.uniform(k2, (2, 3, 15, 17), dtype=jnp.float32)
    for chroma_mode, return_mode in ((0, "default"), (3, "catmax")):
        out = saturation_layer(
            x_ragged, chroma_mode=chroma_mode, return_mode=return_mode
        )
        out = jax.block_until_ready(out)
        ref = _reference(x_ragged, chroma_mode, return_mode)
        if out.shape != ref.shape or not jnp.allclose(out, ref, atol=1e-5, rtol=1e-5):
            ok = False

    if ok:
        print("KERNEL_OK")
</pallas_src>

<mosaic_0001>
module attributes {stable_mosaic.version = 11 : i64} {
  func.func @_saturation_kernel(%arg0: i32, %arg1: i32, %arg2: memref<1x4x2x128xf32, #tpu.memory_space<vmem>>, %arg3: memref<1x1x2x128xf32, #tpu.memory_space<vmem>>) attributes {dimension_semantics = [#tpu.dimension_semantics<parallel>, #tpu.dimension_semantics<parallel>], iteration_bounds = array<i64: 2, 1>, scalar_prefetch = 0 : i64, scratch_operands = 0 : i64, tpu.core_type = #tpu.core_type<tc>, window_params = [{transform_indices = @transform_0, window_bounds = array<i64: 1, 4, 2, 128>}, {transform_indices = @transform_1, window_bounds = array<i64: 1, 1, 2, 128>}]} {
    %c0 = arith.constant 0 : index
    %c0_0 = arith.constant 0 : index
    %c0_1 = arith.constant 0 : index
    %c0_2 = arith.constant 0 : index
    %0 = vector.load %arg2[%c0, %c0_0, %c0_1, %c0_2] : memref<1x4x2x128xf32, #tpu.memory_space<vmem>>, vector<1x4x2x128xf32>
    %cst = arith.constant dense<0xFF800000> : vector<1x2x128xf32>
    %1 = vector.multi_reduction <maximumf>, %0, %cst [1] : vector<1x4x2x128xf32> to vector<1x2x128xf32>
    %2 = vector.shape_cast %1 : vector<1x2x128xf32> to vector<1x1x2x128xf32>
    %cst_3 = arith.constant dense<0x7F800000> : vector<1x2x128xf32>
    %3 = vector.multi_reduction <minimumf>, %0, %cst_3 [1] : vector<1x4x2x128xf32> to vector<1x2x128xf32>
    %4 = vector.shape_cast %3 : vector<1x2x128xf32> to vector<1x1x2x128xf32>
    %cst_4 = arith.constant 0.000000e+00 : f32
    %5 = vector.broadcast %cst_4 : f32 to vector<1x1x2x128xf32>
    %6 = arith.cmpf oeq, %2, %5 : vector<1x1x2x128xf32>
    %cst_5 = arith.constant 1.000000e+00 : f32
    %7 = vector.broadcast %cst_5 : f32 to vector<1x1x2x128xf32>
    %8 = arith.select %6, %7, %2 : vector<1x1x2x128xi1>, vector<1x1x2x128xf32>
    %9 = arith.divf %4, %8 : vector<1x1x2x128xf32>
    %cst_6 = arith.constant 1.000000e+00 : f32
    %10 = vector.broadcast %cst_6 : f32 to vector<1x1x2x128xf32>
    %11 = arith.subf %10, %9 : vector<1x1x2x128xf32>
    %cst_7 = arith.constant 0.000000e+00 : f32
    %12 = vector.broadcast %cst_7 : f32 to vector<1x1x2x128xf32>
    %13 = arith.select %6, %12, %11 : vector<1x1x2x128xi1>, vector<1x1x2x128xf32>
    %14 = arith.cmpf oeq, %2, %4 : vector<1x1x2x128xf32>
    %15 = arith.addf %2, %4 : vector<1x1x2x128xf32>
    %cst_8 = arith.constant 1.000000e+00 : f32
    %16 = vector.broadcast %cst_8 : f32 to vector<1x1x2x128xf32>
    %17 = arith.subf %16, %15 : vector<1x1x2x128xf32>
    %18 = math.absf %17 : vector<1x1x2x128xf32>
    %cst_9 = arith.constant 1.000000e+00 : f32
    %19 = vector.broadcast %cst_9 : f32 to vector<1x1x2x128xf32>
    %20 = arith.subf %19, %18 : vector<1x1x2x128xf32>
    %21 = arith.subf %2, %4 : vector<1x1x2x128xf32>
    %cst_10 = arith.constant 1.000000e+00 : f32
    %22 = vector.broadcast %cst_10 : f32 to vector<1x1x2x128xf32>
    %23 = arith.select %14, %22, %20 : vector<1x1x2x128xi1>, vector<1x1x2x128xf32>
    %24 = arith.divf %21, %23 : vector<1x1x2x128xf32>
    %cst_11 = arith.constant 0.000000e+00 : f32
    %25 = vector.broadcast %cst_11 : f32 to vector<1x1x2x128xf32>
    %26 = arith.select %14, %25, %24 : vector<1x1x2x128xi1>, vector<1x1x2x128xf32>
    %27 = arith.subf %13, %26 : vector<1x1x2x128xf32>
    %cst_12 = arith.constant -0.996078431 : f32
    %28 = vector.broadcast %cst_12 : f32 to vector<1x1x2x128xf32>
    %29 = arith.subf %27, %28 : vector<1x1x2x128xf32>
    %cst_13 = arith.constant 0.85642004 : f32
    %30 = vector.broadcast %cst_13 : f32 to vector<1x1x2x128xf32>
    %31 = arith.mulf %29, %30 : vector<1x1x2x128xf32>
    %cst_14 = arith.constant 0.000000e+00 : f32
    %cst_15 = arith.constant 1.000000e+00 : f32
    %32 = vector.broadcast %cst_14 : f32 to vector<1x1x2x128xf32>
    %33 = arith.maximumf %32, %31 : vector<1x1x2x128xf32>
    %34 = vector.broadcast %cst_15 : f32 to vector<1x1x2x128xf32>
    %35 = arith.minimumf %34, %33 : vector<1x1x2x128xf32>
    %c0_16 = arith.constant 0 : index
    %c0_17 = arith.constant 0 : index
    %c0_18 = arith.constant 0 : index
    %c0_19 = arith.constant 0 : index
    %36 = vector.load %arg3[%c0_16, %c0_17, %c0_18, %c0_19] : memref<1x1x2x128xf32, #tpu.memory_space<vmem>>, vector<1x1x2x128xf32>
    tpu.vector_store %arg3[%c0_16, %c0_17, %c0_18, %c0_19], %35 {strides = array<i32>} : memref<1x1x2x128xf32, #tpu.memory_space<vmem>>, vector<1x1x2x128xf32>,
    return
  }
  func.func @transform_0(%arg0: i32, %arg1: i32) -> (i32, i32, i32, i32) {
    %c0_i32 = arith.constant 0 : i32
    %c0_i32_0 = arith.constant 0 : i32
    %c0_i32_1 = arith.constant 0 : i32
    return %arg0, %c0_i32, %arg1, %c0_i32_0 : i32, i32, i32, i32
  }
  func.func @transform_1(%arg0: i32, %arg1: i32) -> (i32, i32, i32, i32) {
    %c0_i32 = arith.constant 0 : i32
    %c0_i32_0 = arith.constant 0 : i32
    %c0_i32_1 = arith.constant 0 : i32
    return %arg0, %c0_i32, %arg1, %c0_i32_0 : i32, i32, i32, i32
  }
}

</mosaic_0001>

<bundles_post_ra>
// kernel: tpu_custom_call.1
= control target key start
LH: loop header
LB: loop body
LE: loop exit
PB: predicated region body
PF: predicated region fallthrough
CT: control target
= control target key end

     0   :  { %6 = vsyncpa [#allocation3], 0  ;;  %s675_s0 = inlined_call_operand.hbm [shape: f32[2,4,2,128], index: 0, kind: input, shape index: {}]   ;;  %s676_s1 = inlined_call_operand.hbm [shape: f32[2,1,2,128], index: 1, kind: output, shape index: {}]  }
   0x1   :  { %8 = vsyncpa [#allocation3 + $0x1], 0 }
   0x2   :  { %9 = vsyncpa [#allocation4], 0 }
   0x3   :  { %11 = vsyncpa [#allocation4 + $0x1], 0  ;;  %s501_s6 = smov 0   ;;  %s503_s7 = smov 0  }
   0x4   :  { %s505_s8 = smov 0   ;;  %s507_s9 = smov 0  }
   0x5   :  { %s509_s10 = smov 0   ;;  %s511_s11 = smov 0  }
   0x6 LB: > { %s289_s12 = sadd.s32 4294967295, %s485_s11   ;;  %s290_s13 = sadd.s32 4294967294, %s485_s11   ;;  %s485_s11 = sphi %s511_s11, %s17_s11   ;;  %s481_s10 = sphi %s509_s10, %s691_s10   ;;  %s477_s9 = sphi %s507_s9, %s690_s9   ;;  %s473_s8 = sphi %s505_s8, %s689_s8   ;;  %s469_s7 = sphi %s503_s7, %s688_s7   ;;  %s465_s6 = sphi %s501_s6, %s687_s6  }
   0x7   : > { %s29_s14 = sadd.s32 1, %s481_s10  ;;  %s38_s15 = sadd.s32 1, %s473_s8 }
   0x8   : > { %p31_p0 = scmp.ge.s32.totalorder %s29_s14, 2  ;;  %p45_p1 = scmp.ne.s32.totalorder %s473_s8, %s469_s7 }
   0x9   : > { %p46_p2 = scmp.eq.s32.totalorder %s485_s11, 0  ;;  %p51_p3 = scmp.ne.s32.totalorder %s469_s7, %s465_s6 }
   0xa   : > { %s693_s14 = smov (%p31_p0, %s29_s14), 0  ;;  %p52_p5 = scmp.eq.s32.totalorder %s289_s12, 0 }
   0xb   : > { %p542_p4 = por %p46_p2, %p45_p1  ;;  %s33_s17 = ssub.s32 %s481_s10, %s693_s14 }
   0xc   : > { %p77_p6 = scmp.eq.s32.totalorder %s289_s12, 1  ;;  %p36_p7 = scmp.eq.s32.totalorder %s33_s17, 0 }
   0xd   : > { %p548_p8 = por %p52_p5, %p51_p3  ;;  %p83_p10 = scmp.eq.s32.totalorder %s290_s13, 1 }
   0xe   : > { %p552_p9 = por %p77_p6, %p45_p1  ;;  %p317_p13 = scmp.lt.s32.totalorder %s485_s11, 2 }
   0xf   : > { %s557_s20 = scalar_select %p36_p7, %s473_s8, %s38_s15  }
  0x10   : > { %s680_s19 = scalar_select %p552_p9, 1, 0 }
  0x11   : > { %p559_p11 = por %p83_p10, %p51_p3  ;;  %s103_s22 = sand.u32 1, %s473_s8  }
  0x12   : > { %s293_s23 = sshll.u32 %s103_s22, 3  ;;  %s304_s24 = sshll.u32 %s481_s10, 7 }
  0x13   : > { %s681_s21 = scalar_select %p559_p11, 1, 0 }
  0x14   : > { %s570_s27 = scalar_lea.hbm %s675_s0, %s304_s24  ;;  %s107_s28 = scalar_lea.vmem [#allocation2], %s293_s23 }
  0x15   : > { %s115_s29 = sshll.u32 %s107_s28, 4  ;;  %p576_p0 = pnand %p317_p13, %p542_p4  ;;  %s572_s29 = int_to_ptr.vmem [resolvable:$true] %s115_s29 }
  0x16   : > { %s581_s2 = scalar_lea.sflag [#allocation3], %s103_s22  ;;  %s373_s3 = scalar_lea.hbm %s570_s27, 128 }
  0x17   : > { %p374_p2 = scmp.ne.s32.totalorder %s570_s27, %s373_s3  ;;  %p375_p3 = pneg %p576_p0 }
  0x18   : > { %s378_s12 = scalar_lea.hbm %s675_s0, 256  ;;  %p379_p4 = scmp.lt.u32.totalorder %s570_s27, %s675_s0 }
  0x19   : > { %p376_p5 = pnand %p375_p3, %p374_p2  ;;  %p380_p7 = scmp.lt.u32.totalorder %s378_s12, %s373_s3 }
  0x1a   : > { %p382_p13 = scmp.lt.u32.totalorder %s373_s3, %s570_s27 }
  0x1b   : > { %p377_p6 = pneg %p376_p5  ;;  %p381_p10 = por %p380_p7, %p379_p4 }
  0x1d   : > { %p383_p12 = por %p382_p13, %p381_p10 }
  0x1f   : > { %p384_p1 = pnand %p383_p12, %p377_p6 }
  0x21   : > { %387 = shalt.err (!%p384_p1)
}
  0x22   : > { %s388_s16 = scalar_lea.vmem %s572_s29, 128  ;;  %s487_s17 = smov [#allocation2]  }
  0x23   : > { %p389_p2 = scmp.ne.s32.totalorder %s572_s29, %s388_s16  ;;  %s393_s22 = sshll.u32 %s487_s17, 4  ;;  %s394_s22 = int_to_ptr.vmem [resolvable:$false] %s393_s22 }
  0x24   : > { %s395_s23 = scalar_lea.vmem %s394_s22, 256  ;;  %p396_p9 = scmp.lt.s32.totalorder %s572_s29, %s394_s22 }
  0x25   : > { %p391_p5 = pnand %p389_p2, %p375_p3  ;;  %p397_p4 = scmp.lt.s32.totalorder %s395_s23, %s388_s16 }
  0x27   : > { %p392_p11 = pneg %p391_p5  ;;  %p398_p7 = por %p397_p4, %p396_p9 }
  0x29   : > { %p399_p10 = pnand %p398_p7, %p392_p11 }
  0x2b   : > { %402 = shalt.err (!%p399_p10)
}
  0x2c   : > { %s488_s24 = smov 32   ;;  %s489_s25 = smov 2  }
  0x2d   : > { %312 = dma.hbm_to_vmem [thread:$0]  (!%p576_p0), %s570_s27, 128, %s572_s29, %s581_s2, %s488_s24, %s488_s24, %s489_s25  }
  0x2e   : > { %p123_p12 = scmp.lt.s32.totalorder %s485_s11, 3  ;;  %p683_p1 = scmp.ge.s32.totalorder %s485_s11, 1 }
  0x30   : > { %p124_p3 = pnand %p683_p1, %p123_p12 }
  0x31   : > { %s613_s26 = sand.u32 (!%p124_p3), 1, %s469_s7  }
  0x32   : > { %127 = sbr.rel (%p124_p3) target bundleno = 113 (0x71), region = 24  ;;  %s297_s28 = sshll.u32 (!%p124_p3), %s613_s26, 3 }
  0x33   : > { %s130_s3 = scalar_lea.sflag (!%p124_p3), [#allocation3], %s613_s26  ;;  %s133_s4 = scalar_lea.vmem (!%p124_p3), [#allocation2], %s297_s28 }
  0x39   : > { %456 = dma.done.wait (%p548_p8), %s130_s3, 128  }
  0x3a   : > { %458 = vsyncadd (%p548_p8), %s130_s3, 4294967168  ;;  %vm156_vm0 = vcmask 1041408   ;;  %v152_v0 = vld [vmem:[%s133_s4] sm:$0x3]  ;;  %v153_v1 = vld [vmem:[%s133_s4 + $0x2] sm:$0x3] }
  0x3b   : > { %v154_v2 = vld [vmem:[%s133_s4 + $0x4] sm:$0x3]  ;;  %v155_v3 = vld [vmem:[%s133_s4 + $0x6] sm:$0x3]  ;;  %v157_v4 = vsel %vm156_vm0, %v152_v0, -inf  ;;  %v158_v5 = vsel %vm156_vm0, %v153_v1, -inf }
  0x3c   : > { %v159_v6 = vsel %vm156_vm0, %v154_v2, -inf  ;;  %v164_v7 = vsel %vm156_vm0, %v152_v0, inf  ;;  %v160_v8 = vsel %vm156_vm0, %v155_v3, -inf  ;;  %v161_v9 = vmax.f32 %v157_v4, %v158_v5  ;;  %s298_s18 = sshll.u32 %s613_s26, 1  ;;  %s301_s30 = sshll.u32 %s477_s9, 5 }
  0x3d   : > { %v165_v10 = vsel %vm156_vm0, %v153_v1, inf  ;;  %v166_v11 = vsel %vm156_vm0, %v154_v2, inf  ;;  %v162_v12 = vmax.f32 %v159_v6, %v160_v8  ;;  %v167_v13 = vsel %vm156_vm0, %v155_v3, inf  ;;  %s151_s27 = scalar_lea.vmem [#allocation5], %s298_s18  ;;  %s628_s12 = scalar_lea.hbm %s676_s1, %s301_s30 }
  0x3e   : > { %v168_v14 = vmin.f32 %v164_v7, %v165_v10  ;;  %v169_v15 = vmin.f32 %v166_v11, %v167_v13  ;;  %s208_s29 = sshll.u32 %s151_s27, 4  ;;  %s194_s13 = scalar_lea.sflag [#allocation4], %s613_s26  ;;  %s623_s29 = int_to_ptr.vmem [resolvable:$true] %s208_s29 }
  0x3f   : > { %v163_v16 = vmax.f32 %v161_v9, %v162_v12  ;;  %s403_s15 = scalar_lea.vmem %s623_s29, 32  ;;  %p684_p9 = scmp.ne.s32.totalorder %s680_s19, 0 }
  0x40   : > { %v170_v17 = vmin.f32 %v168_v14, %v169_v15  ;;  %p404_p8 = scmp.ne.s32.totalorder %s623_s29, %s403_s15  ;;  %s490_s9 = smov [#allocation5]  }
  0x41   : > { %vm171_vm1 = vcmp.eq.f32.partialorder %v163_v16, 0.0  ;;  %s407_s16 = sshll.u32 %s490_s9, 4  ;;  %s408_s16 = int_to_ptr.vmem [resolvable:$false] %s407_s16 }
  0x42   : > { %v172_v18 = vsel %vm171_vm1, 1.0, %v163_v16  ;;  %v178_v19 = vadd.f32 %v170_v17, %v163_v16  ;;  %vm177_vm2 = vcmp.eq.f32.partialorder %v163_v16, %v170_v17  ;;  %v182_v27 = vsub.f32 %v163_v16, %v170_v17  ;;  %p405_p11 = pnand %p404_p8, %p684_p9  ;;  %s409_s17 = scalar_lea.vmem %s408_s16, 64 }
  0x43   : > { %369 = vrcp.f32 %v172_v18  ;;  %p410_p6 = scmp.lt.s32.totalorder %s623_s29, %s408_s16  ;;  %p411_p13 = scmp.lt.s32.totalorder %s409_s17, %s403_s15 }
  0x44   : > { %v179_v20 = vsub.f32 1.0, %v178_v19  ;;  %p406_p0 = pneg %p405_p11 }
  0x45   : > { %p412_p2 = por %p411_p13, %p410_p6 }
  0x46   : > { %v180_v21 = vand.u32 2147483647, %v179_v20 }
  0x47   : > { %p413_p5 = pnand %p412_p2, %p406_p0 }
  0x48   : > { %v181_v22 = vsub.f32 1.0, %v180_v21 }
  0x4a   : > { %v183_v23 = vsel %vm177_vm2, 1.0, %v181_v22 }
  0x4b   : > { %371 = vrcp.f32 %v183_v23 }
  0x4d   : > { %v370_v24 = vpop.eup %369 }
  0x4e   : > { %v174_v25 = vmul.f32 %v370_v24, %v170_v17 }
  0x50   : > { %v175_v26 = vsub.f32 1.0, %v174_v25 }
  0x52   : > { %v176_v29 = vsel %vm171_vm1, 0.0, %v175_v26 }
  0x55   : > { %v372_v28 = vpop.eup %371 }
  0x56   : > { %v185_v30 = vmul.f32 %v372_v28, %v182_v27 }
  0x58   : > { %v186_v31 = vsel %vm177_vm2, 0.0, %v185_v30 }
  0x59   : > { %v187_v32 = vsub.f32 %v176_v29, %v186_v31 }
  0x5b   : > { %v299_v33 = vadd.f32 0.99607843, %v187_v32 }
  0x5d   : > { %v189_v34 = vmul.f32 0.85642004, %v299_v33 }
  0x5f   : > { %v190_v35 = vmax.f32 %v189_v34, 0.0 }
  0x61   : > { %v191_v36 = vmin.f32 %v190_v35, 1.0 }
  0x63   : > { %192 = vst [vmem:[%s151_s27] sm:$0x3] %v191_v36 }
  0x64   : > { %416 = shalt.err (!%p413_p5)
}
  0x65   : > { %s417_s22 = scalar_lea.hbm %s628_s12, 32  ;;  %s421_s25 = scalar_lea.hbm %s676_s1, 64 }
  0x66   : > { %p418_p4 = scmp.ne.s32.totalorder %s628_s12, %s417_s22  ;;  %p422_p12 = scmp.lt.u32.totalorder %s628_s12, %s676_s1 }
  0x67   : > { %p423_p1 = scmp.lt.u32.totalorder %s421_s25, %s417_s22  ;;  %p425_p8 = scmp.lt.u32.totalorder %s417_s22, %s628_s12 }
  0x68   : > { %p419_p7 = pnand %p418_p4, %p684_p9 }
  0x69   : > { %p424_p3 = por %p423_p1, %p422_p12 }
  0x6a   : > { %p420_p10 = pneg %p419_p7 }
  0x6b   : > { %p426_p11 = por %p425_p8, %p424_p3 }
  0x6d   : > { %p427_p0 = pnand %p426_p11, %p420_p10 }
  0x6f   : > { %430 = shalt.err (!%p427_p0)
}
  0x70   : > { %307 = dma.vmem_to_hbm [thread:$0]  (%p684_p9), %s623_s29, 32, %s628_s12, %s194_s13  }
  0x71 PF: > { %s220_s3 = sand.u32 1, %s465_s6   ;;  %p685_p6 = scmp.ne.s32.totalorder %s681_s21, 0 }
  0x72   : > { %p686_p13 = scmp.ge.s32.totalorder %s485_s11, 2  ;;  %s221_s4 = scalar_lea.sflag [#allocation4], %s220_s3 }
  0x74   : > { %p314_p2 = pnand %p686_p13, %p685_p6 }
  0x76   : > { %460 = dma.done.wait (!%p314_p2), %s221_s4, 32  }
  0x77   : > { %462 = vsyncadd (!%p314_p2), %s221_s4, 4294967264  ;;  %s17_s11 = sadd.s32 1, %s485_s11   ;;  %s687_s6 = smov %s469_s7 }
  0x78   : > { %p14_p5 = scmp.ge.s32.totalorder %s17_s11, 4   ;;  %s688_s7 = smov %s473_s8 }
  0x79   : > { %s689_s8 = smov %s557_s20  ;;  %s690_s9 = smov %s481_s10 }
  0x7a   : > { %s691_s10 = smov %s693_s14  ;;  %16 = sbr.rel (!%p14_p5) target bundleno = 6 (0x6), region = 69 }
  0x81   :  { %226 = vsyncpa [#allocation3], 1 }
  0x82   :  { %228 = vsyncpa [#allocation3 + $0x1], 1 }
  0x83   :  { %229 = vsyncpa [#allocation4], 1 }
  0x84   :  { %231 = vsyncpa [#allocation4 + $0x1], 1 }

</bundles_post_ra>
